<compile_context>
chip_gen: v7x
topology: tpu7x:2x2x1
jax: 0.10.0
libtpu: 0.0.40
codegen_flags: <defaults>
</compile_context>

<pallas_src>
import jax
import jax.numpy as jnp
import numpy as np
from jax.experimental import pallas as pl
from jax.experimental.pallas import tpu as pltpu

LN_EPS = 1e-5  # GPT2 ln_f default


def _round_up(x, m):
    return ((x + m - 1) // m) * m


def _default_vmem_limit_bytes():
    """Generation-aware scoped-VMEM budget: v7x has 64 MiB/TC, v5e/v6e 128 MiB."""
    cap = None
    try:
        cap = getattr(pltpu.get_tpu_info(), "vmem_capacity_bytes", None)
    except Exception:  # info unavailable (e.g. emulator) -> conservative default
        cap = None
    if cap is None:
        cap = 64 * 1024 * 1024
    if cap <= 64 * 1024 * 1024:
        return 44 * 1024 * 1024      # v7x-class: leave headroom under 64 MiB
    return 96 * 1024 * 1024          # v5e/v6e-class: 128 MiB physical


# ----------------------------------------------------------------------------- 
# Phase 1: per-lens affine + (optional) final LayerNorm, cached as bf16.
# -----------------------------------------------------------------------------
def _lens_ln_kernel(lids_ref, flags_ref, x_ref, wl_ref, bl_ref, g_ref, b_ref, y_ref):
    """One grid step == one (lens, batch-row, token-tile).

    lids_ref : SMEM (L,) int32  layer index per lens (used by the index_maps)
    flags_ref: SMEM (L,) int32  1 -> apply ln_f, 0 -> skip (layer == num_layers / -1)
    x_ref    : (1, 1, ts, H) bf16  hidden states of the selected layer
    wl_ref   : (1, H, H)     bf16  affine (tuned) lens weight
    bl_ref   : (1, 1, H)     f32   affine lens bias
    g_ref    : (1, H)        f32   ln_f gamma
    b_ref    : (1, H)        f32   ln_f beta
    y_ref    : (1, 1, ts, H) bf16  lens(+LN) result
    """
    l = pl.program_id(0)
    h = x_ref[0, 0]                                                   # (ts, H) bf16
    y = jnp.dot(h, wl_ref[0], preferred_element_type=jnp.float32) + bl_ref[0]

    @pl.when(flags_ref[l] > 0)         # mid layers: ln_f(lens(h))
    def _():
        mu = jnp.mean(y, axis=-1, keepdims=True)
        var = jnp.mean((y - mu) ** 2, axis=-1, keepdims=True)
        y_ln = (y - mu) * jax.lax.rsqrt(var + LN_EPS) * g_ref[...] + b_ref[...]
        y_ref[0, 0] = y_ln.astype(y_ref.dtype)

    @pl.when(flags_ref[l] == 0)        # layer == num_layers or -1: skip ln_f
    def _():
        y_ref[0, 0] = y.astype(y_ref.dtype)


# -----------------------------------------------------------------------------
# Phase 2: unembedding GEMM, vocab axis outermost so W_U tiles are read ~once.
# -----------------------------------------------------------------------------
def _unembed_kernel(y_ref, wu_ref, o_ref):
    """y_ref: (1,1,ts,H) bf16; wu_ref: (H,tv) bf16; o_ref: (1,1,ts,tv) out_dtype."""
    o_ref[0, 0] = jnp.dot(y_ref[0, 0], wu_ref[...],
                          preferred_element_type=jnp.float32).astype(o_ref.dtype)


def lens_model_logits(hs, layer_ids, apply_ln, w_lens, b_lens, gamma, beta,
                      w_unembed, *, ts=512, tv=2048, out_dtype=jnp.bfloat16,
                      vmem_limit_bytes=None):
    """hs: (B, num_layers+1, S, H). Returns (L, B, S, V) logits in out_dtype."""
    B, n_layer_states, S, H = hs.shape
    V = w_unembed.shape[1]
    L = int(w_lens.shape[0])
    if vmem_limit_bytes is None:
        vmem_limit_bytes = _default_vmem_limit_bytes()

    # bf16 feeds for the MXU; LN math / bias / gamma / beta and accumulation stay f32.
    hs_b = hs.astype(jnp.bfloat16)
    wl_b = w_lens.astype(jnp.bfloat16)
    wu_b = w_unembed.astype(jnp.bfloat16)
    bl_f = b_lens.astype(jnp.float32)
    g_f = gamma.reshape(1, H).astype(jnp.float32)
    be_f = beta.reshape(1, H).astype(jnp.float32)

    # Token tile multiple of 16 (bf16 sublane packing), vocab tile multiple of 128
    # (lane-dense, unmasked stores); clamp to the problem size for small shapes.
    ts = _round_up(min(ts, S), 16)
    tv = _round_up(min(tv, V), 128)
    Sp = _round_up(S, ts)
    Vp = _round_up(V, tv)
    if Sp != S:
        hs_b = jnp.pad(hs_b, ((0, 0), (0, 0), (0, Sp - S), (0, 0)))
    if Vp != V:
        wu_b = jnp.pad(wu_b, ((0, 0), (0, Vp - V)))

    # ---------------- phase 1: lens affine + optional ln_f -> (L, B, Sp, H) bf16
    y_all = pl.pallas_call(
        _lens_ln_kernel,
        out_shape=jax.ShapeDtypeStruct((L, B, Sp, H), jnp.bfloat16),
        grid_spec=pltpu.PrefetchScalarGridSpec(
            num_scalar_prefetch=2,          # layer_ids + apply_ln flags land in SMEM
            grid=(L, B, Sp // ts),
            in_specs=[
                pl.BlockSpec((1, 1, ts, H),
                             lambda l, b, s, lids, flags: (b, lids[l], s, 0)),
                pl.BlockSpec((1, H, H),
                             lambda l, b, s, lids, flags: (l, 0, 0)),   # w_lens
                pl.BlockSpec((1, 1, H),
                             lambda l, b, s, lids, flags: (l, 0, 0)),   # b_lens
                pl.BlockSpec((1, H),
                             lambda l, b, s, lids, flags: (0, 0)),      # gamma
                pl.BlockSpec((1, H),
                             lambda l, b, s, lids, flags: (0, 0)),      # beta
            ],
            out_specs=pl.BlockSpec((1, 1, ts, H),
                                   lambda l, b, s, lids, flags: (l, b, s, 0)),
        ),
        compiler_params=pltpu.CompilerParams(
            dimension_semantics=("parallel", "parallel", "parallel"),
            vmem_limit_bytes=vmem_limit_bytes,
        ),
    )(layer_ids, apply_ln, hs_b, wl_b, bl_f, g_f, be_f)

    # ---------------- phase 2: unembed GEMM -> (L, B, Sp, Vp) out_dtype
    # vocab axis OUTERMOST: the W_U block index only changes when v changes, so each
    # (H, tv) tile is DMA'd once and reused for all (l, b, s) blocks (Pallas skips
    # re-copies when the block index is unchanged between consecutive grid steps).
    out = pl.pallas_call(
        _unembed_kernel,
        out_shape=jax.ShapeDtypeStruct((L, B, Sp, Vp), out_dtype),
        grid_spec=pltpu.PrefetchScalarGridSpec(
            num_scalar_prefetch=0,
            grid=(Vp // tv, L, B, Sp // ts),
            in_specs=[
                pl.BlockSpec((1, 1, ts, H), lambda v, l, b, s: (l, b, s, 0)),  # y
                pl.BlockSpec((H, tv),       lambda v, l, b, s: (0, v)),        # W_U tile
            ],
            out_specs=pl.BlockSpec((1, 1, ts, tv), lambda v, l, b, s: (l, b, s, v)),
        ),
        compiler_params=pltpu.CompilerParams(
            dimension_semantics=("parallel", "parallel", "parallel", "parallel"),
            vmem_limit_bytes=vmem_limit_bytes,
        ),
    )(y_all, wu_b)

    if Sp != S or Vp != V:
        out = out[:, :, :S, :V]
    return out


def lens_model_forward(hs, layers, w_lens, b_lens, gamma, beta, w_unembed,
                       num_layers, *, lens_last=False, **tile_kwargs):
    """hs: (B, num_layers+1, S, H) stacked hidden states (torch.stack(..., dim=1)).

    Returns lens-major (L, B, S, V) by default (no full-tensor transpose).
    lens_last=True reproduces the exact torch layout (B, S, V, L) at the cost of
    an extra full read+write of the logits tensor.
    """
    B, n_layer_states, S, H = hs.shape
    # torch hs[:, -1] == hs[:, num_layers]
    layer_ids = jnp.array(
        [n_layer_states - 1 if ly == -1 else ly for ly in layers], dtype=jnp.int32)
    apply_ln = jnp.array(
        [0 if (ly == -1 or ly == num_layers) else 1 for ly in layers],
        dtype=jnp.int32)
    logits = lens_model_logits(hs, layer_ids, apply_ln, w_lens, b_lens, gamma,
                               beta, w_unembed, **tile_kwargs)
    if lens_last:
        return jnp.transpose(logits, (1, 2, 3, 0))   # == torch.stack(output, dim=-1)
    return logits


def reference_forward(hs, layers, w_lens, b_lens, gamma, beta, w_unembed, num_layers):
    """Pure-JAX reference with the same mixed precision as the kernel
    (bf16 MXU inputs / bf16 cached lens output, f32 LayerNorm and accumulation).
    Returns lens-major (L, B, S, V) f32."""
    wu_b = w_unembed.astype(jnp.bfloat16)
    outs = []
    for i, ly in enumerate(layers):
        h = hs[:, ly].astype(jnp.bfloat16)                         # (B, S, H)
        y = jnp.einsum("bsh,hk->bsk", h, w_lens[i].astype(jnp.bfloat16),
                       preferred_element_type=jnp.float32) + b_lens[i, 0]
        if not (ly == -1 or ly == num_layers):
            mu = jnp.mean(y, axis=-1, keepdims=True)
            var = jnp.mean((y - mu) ** 2, axis=-1, keepdims=True)
            y = (y - mu) / jnp.sqrt(var + LN_EPS) * gamma + beta
        outs.append(jnp.einsum("bsh,hv->bsv", y.astype(jnp.bfloat16), wu_b,
                               preferred_element_type=jnp.float32))
    return jnp.stack(outs, axis=0)


if __name__ == "__main__":
    # Small synthetic configuration (gpt2-like, shrunk). S and V are chosen so the
    # kernels exercise multi-tile grids AND the padding/slicing paths.
    B, S, H, V = 2, 24, 32, 200
    num_hidden_layers = 4
    # one "mid" layer (ln_f applied), one final layer and the -1 alias (both skip ln_f)
    layers = [1, num_hidden_layers, -1]
    L = len(layers)

    key = jax.random.PRNGKey(0)
    k_hs, k_wl, k_bl, k_g, k_b, k_wu = jax.random.split(key, 6)

    # Synthetic stacked hidden states: (B, num_hidden_layers + 1, S, H)
    hs = jax.random.normal(k_hs, (B, num_hidden_layers + 1, S, H), dtype=jnp.float32)

    # Deterministic "tuned lens" parameters: near-identity affine per lens.
    w_lens = (jnp.eye(H, dtype=jnp.float32)[None]
              + 0.02 * jax.random.normal(k_wl, (L, H, H), dtype=jnp.float32))
    b_lens = 0.02 * jax.random.normal(k_bl, (L, 1, H), dtype=jnp.float32)

    # ln_f parameters.
    gamma = 1.0 + 0.05 * jax.random.normal(k_g, (H,), dtype=jnp.float32)
    beta = 0.05 * jax.random.normal(k_b, (H,), dtype=jnp.float32)

    # Unembedding (lm_head weight stored (H, V), no bias).
    w_unembed = 0.05 * jax.random.normal(k_wu, (H, V), dtype=jnp.float32)

    # Small tiles so the test runs multi-tile grids:
    #   phase 1: (L=3, B=2, S-tiles=2);  phase 2: (V-tiles=2, L=3, B=2, S-tiles=2)
    out = lens_model_forward(hs, layers, w_lens, b_lens, gamma, beta,
                             w_unembed, num_hidden_layers, ts=16, tv=128)
    out = jax.block_until_ready(out)
    assert out.shape == (L, B, S, V)

    ref = reference_forward(hs, layers, w_lens, b_lens, gamma, beta,
                            w_unembed, num_hidden_layers)
    np.testing.assert_allclose(np.asarray(out.astype(jnp.float32)),
                               np.asarray(ref), rtol=2e-2, atol=2e-2)

    # Optional exact-torch layout (B, S, V, L) — just a transpose of the same logits.
    out_torch_layout = lens_model_forward(hs, layers, w_lens, b_lens, gamma, beta,
                                          w_unembed, num_hidden_layers,
                                          lens_last=True, ts=16, tv=128)
    out_torch_layout = jax.block_until_ready(out_torch_layout)
    assert out_torch_layout.shape == (B, S, V, L)

    print("KERNEL_OK")
</pallas_src>

<mosaic_0001>
module attributes {stable_mosaic.version = 11 : i64} {
  func.func @_lens_ln_kernel(%arg0: i32, %arg1: i32, %arg2: i32, %arg3: memref<3xi32, #tpu.memory_space<smem>>, %arg4: memref<3xi32, #tpu.memory_space<smem>>, %arg5: memref<1x1x16x32xbf16, #tpu.memory_space<vmem>>, %arg6: memref<1x32x32xbf16, #tpu.memory_space<vmem>>, %arg7: memref<1x1x32xf32, #tpu.memory_space<vmem>>, %arg8: memref<1x32xf32, #tpu.memory_space<vmem>>, %arg9: memref<1x32xf32, #tpu.memory_space<vmem>>, %arg10: memref<1x1x16x32xbf16, #tpu.memory_space<vmem>>) attributes {dimension_semantics = [#tpu.dimension_semantics<parallel>, #tpu.dimension_semantics<parallel>, #tpu.dimension_semantics<parallel>], iteration_bounds = array<i64: 3, 2, 2>, scalar_prefetch = 2 : i64, scratch_operands = 0 : i64, tpu.core_type = #tpu.core_type<tc>, window_params = [{transform_indices = @transform_0, window_bounds = array<i64: 1, 1, 16, 32>}, {transform_indices = @transform_1, window_bounds = array<i64: 1, 32, 32>}, {transform_indices = @transform_2, window_bounds = array<i64: 1, 1, 32>}, {pipeline_mode = #tpu.pipeline_mode<synchronous>, transform_indices = @transform_3, window_bounds = array<i64: 1, 32>}, {pipeline_mode = #tpu.pipeline_mode<synchronous>, transform_indices = @transform_4, window_bounds = array<i64: 1, 32>}, {transform_indices = @transform_5, window_bounds = array<i64: 1, 1, 16, 32>}]} {
    %c0 = arith.constant 0 : index
    %c0_0 = arith.constant 0 : index
    %c0_1 = arith.constant 0 : index
    %c0_2 = arith.constant 0 : index
    %0 = vector.load %arg5[%c0, %c0_0, %c0_1, %c0_2] : memref<1x1x16x32xbf16, #tpu.memory_space<vmem>>, vector<1x1x16x32xbf16>
    %1 = vector.shape_cast %0 : vector<1x1x16x32xbf16> to vector<16x32xbf16>
    %c0_3 = arith.constant 0 : index
    %c0_4 = arith.constant 0 : index
    %c0_5 = arith.constant 0 : index
    %2 = vector.load %arg6[%c0_3, %c0_4, %c0_5] : memref<1x32x32xbf16, #tpu.memory_space<vmem>>, vector<1x32x32xbf16>
    %3 = vector.shape_cast %2 : vector<1x32x32xbf16> to vector<32x32xbf16>
    %cst = arith.constant dense<0.000000e+00> : vector<16x32xf32>
    %4 = tpu.matmul %1, %3, %cst {dimension_numbers = #tpu.dot_dimension_numbers<[1], [0], [0], [1], [0, 0, 1, 1], [], []>} : vector<16x32xbf16>, vector<32x32xbf16>, vector<16x32xf32> -> vector<16x32xf32>
    %c0_6 = arith.constant 0 : index
    %c0_7 = arith.constant 0 : index
    %c0_8 = arith.constant 0 : index
    %5 = vector.load %arg7[%c0_6, %c0_7, %c0_8] : memref<1x1x32xf32, #tpu.memory_space<vmem>>, vector<1x1x32xf32>
    %6 = vector.shape_cast %5 : vector<1x1x32xf32> to vector<1x32xf32>
    %7 = vector.broadcast %6 : vector<1x32xf32> to vector<16x32xf32>
    %8 = arith.addf %4, %7 : vector<16x32xf32>
    %9 = arith.index_cast %arg0 : i32 to index
    %10 = memref.load %arg4[%9] : memref<3xi32, #tpu.memory_space<smem>>
    %c0_i32 = arith.constant 0 : i32
    %11 = arith.cmpi sgt, %10, %c0_i32 : i32
    %12 = arith.extui %11 : i1 to i32
    %c0_i32_9 = arith.constant 0 : i32
    %13 = arith.cmpi ne, %12, %c0_i32_9 : i32
    scf.if %13 {
      %cst_12 = arith.constant dense<0.000000e+00> : vector<16xf32>
      %19 = vector.multi_reduction <add>, %8, %cst_12 [1] : vector<16x32xf32> to vector<16xf32>
      %20 = vector.shape_cast %19 : vector<16xf32> to vector<16x1xf32>
      %cst_13 = arith.constant 3.200000e+01 : f32
      %21 = vector.broadcast %cst_13 : f32 to vector<16x1xf32>
      %22 = arith.divf %20, %21 : vector<16x1xf32>
      %23 = vector.broadcast %22 : vector<16x1xf32> to vector<16x32xf32>
      %24 = arith.subf %8, %23 : vector<16x32xf32>
      %25 = arith.mulf %24, %24 : vector<16x32xf32>
      %cst_14 = arith.constant dense<0.000000e+00> : vector<16xf32>
      %26 = vector.multi_reduction <add>, %25, %cst_14 [1] : vector<16x32xf32> to vector<16xf32>
      %27 = vector.shape_cast %26 : vector<16xf32> to vector<16x1xf32>
      %cst_15 = arith.constant 3.200000e+01 : f32
      %28 = vector.broadcast %cst_15 : f32 to vector<16x1xf32>
      %29 = arith.divf %27, %28 : vector<16x1xf32>
      %30 = vector.broadcast %22 : vector<16x1xf32> to vector<16x32xf32>
      %31 = arith.subf %8, %30 : vector<16x32xf32>
      %cst_16 = arith.constant 9.99999974E-6 : f32
      %32 = vector.broadcast %cst_16 : f32 to vector<16x1xf32>
      %33 = arith.addf %29, %32 : vector<16x1xf32>
      %34 = math.rsqrt %33 : vector<16x1xf32>
      %35 = vector.broadcast %34 : vector<16x1xf32> to vector<16x32xf32>
      %36 = arith.mulf %31, %35 : vector<16x32xf32>
      %c0_17 = arith.constant 0 : index
      %c0_18 = arith.constant 0 : index
      %37 = vector.load %arg8[%c0_17, %c0_18] : memref<1x32xf32, #tpu.memory_space<vmem>>, vector<1x32xf32>
      %38 = vector.broadcast %37 : vector<1x32xf32> to vector<16x32xf32>
      %39 = arith.mulf %36, %38 : vector<16x32xf32>
      %c0_19 = arith.constant 0 : index
      %c0_20 = arith.constant 0 : index
      %40 = vector.load %arg9[%c0_19, %c0_20] : memref<1x32xf32, #tpu.memory_space<vmem>>, vector<1x32xf32>
      %41 = vector.broadcast %40 : vector<1x32xf32> to vector<16x32xf32>
      %42 = arith.addf %39, %41 : vector<16x32xf32>
      %43 = arith.truncf %42 : vector<16x32xf32> to vector<16x32xbf16>
      %c0_21 = arith.constant 0 : index
      %c0_22 = arith.constant 0 : index
      %c0_23 = arith.constant 0 : index
      %c0_24 = arith.constant 0 : index
      %44 = vector.load %arg10[%c0_21, %c0_22, %c0_23, %c0_24] : memref<1x1x16x32xbf16, #tpu.memory_space<vmem>>, vector<1x1x16x32xbf16>
      %45 = vector.shape_cast %44 : vector<1x1x16x32xbf16> to vector<16x32xbf16>
      %46 = vector.shape_cast %43 : vector<16x32xbf16> to vector<1x1x16x32xbf16>
      tpu.vector_store %arg10[%c0_21, %c0_22, %c0_23, %c0_24], %46 {strides = array<i32>} : memref<1x1x16x32xbf16, #tpu.memory_space<vmem>>, vector<1x1x16x32xbf16>,
    } else {
    }
    %14 = arith.index_cast %arg0 : i32 to index
    %15 = memref.load %arg4[%14] : memref<3xi32, #tpu.memory_space<smem>>
    %c0_i32_10 = arith.constant 0 : i32
    %16 = arith.cmpi eq, %15, %c0_i32_10 : i32
    %17 = arith.extui %16 : i1 to i32
    %c0_i32_11 = arith.constant 0 : i32
    %18 = arith.cmpi ne, %17, %c0_i32_11 : i32
    scf.if %18 {
      %19 = arith.truncf %8 : vector<16x32xf32> to vector<16x32xbf16>
      %c0_12 = arith.constant 0 : index
      %c0_13 = arith.constant 0 : index
      %c0_14 = arith.constant 0 : index
      %c0_15 = arith.constant 0 : index
      %20 = vector.load %arg10[%c0_12, %c0_13, %c0_14, %c0_15] : memref<1x1x16x32xbf16, #tpu.memory_space<vmem>>, vector<1x1x16x32xbf16>
      %21 = vector.shape_cast %20 : vector<1x1x16x32xbf16> to vector<16x32xbf16>
      %22 = vector.shape_cast %19 : vector<16x32xbf16> to vector<1x1x16x32xbf16>
      tpu.vector_store %arg10[%c0_12, %c0_13, %c0_14, %c0_15], %22 {strides = array<i32>} : memref<1x1x16x32xbf16, #tpu.memory_space<vmem>>, vector<1x1x16x32xbf16>,
    } else {
    }
    return
  }
  func.func @transform_0(%arg0: i32, %arg1: i32, %arg2: i32, %arg3: memref<3xi32, #tpu.memory_space<smem>>, %arg4: memref<3xi32, #tpu.memory_space<smem>>) -> (i32, i32, i32, i32) {
    %0 = arith.index_cast %arg0 : i32 to index
    %1 = memref.load %arg3[%0] : memref<3xi32, #tpu.memory_space<smem>>
    %c0_i32 = arith.constant 0 : i32
    %c0_i32_0 = arith.constant 0 : i32
    return %arg1, %1, %arg2, %c0_i32 : i32, i32, i32, i32
  }
  func.func @transform_1(%arg0: i32, %arg1: i32, %arg2: i32, %arg3: memref<3xi32, #tpu.memory_space<smem>>, %arg4: memref<3xi32, #tpu.memory_space<smem>>) -> (i32, i32, i32) {
    %c0_i32 = arith.constant 0 : i32
    %c0_i32_0 = arith.constant 0 : i32
    %c0_i32_1 = arith.constant 0 : i32
    return %arg0, %c0_i32, %c0_i32_0 : i32, i32, i32
  }
  func.func @transform_2(%arg0: i32, %arg1: i32, %arg2: i32, %arg3: memref<3xi32, #tpu.memory_space<smem>>, %arg4: memref<3xi32, #tpu.memory_space<smem>>) -> (i32, i32, i32) {
    %c0_i32 = arith.constant 0 : i32
    %c0_i32_0 = arith.constant 0 : i32
    %c0_i32_1 = arith.constant 0 : i32
    return %arg0, %c0_i32, %c0_i32_0 : i32, i32, i32
  }
  func.func @transform_3(%arg0: i32, %arg1: i32, %arg2: i32, %arg3: memref<3xi32, #tpu.memory_space<smem>>, %arg4: memref<3xi32, #tpu.memory_space<smem>>) -> (i32, i32) {
    %c0_i32 = arith.constant 0 : i32
    %c0_i32_0 = arith.constant 0 : i32
    %c0_i32_1 = arith.constant 0 : i32
    return %c0_i32, %c0_i32_0 : i32, i32
  }
  func.func @transform_4(%arg0: i32, %arg1: i32, %arg2: i32, %arg3: memref<3xi32, #tpu.memory_space<smem>>, %arg4: memref<3xi32, #tpu.memory_space<smem>>) -> (i32, i32) {
    %c0_i32 = arith.constant 0 : i32
    %c0_i32_0 = arith.constant 0 : i32
    %c0_i32_1 = arith.constant 0 : i32
    return %c0_i32, %c0_i32_0 : i32, i32
  }
  func.func @transform_5(%arg0: i32, %arg1: i32, %arg2: i32, %arg3: memref<3xi32, #tpu.memory_space<smem>>, %arg4: memref<3xi32, #tpu.memory_space<smem>>) -> (i32, i32, i32, i32) {
    %c0_i32 = arith.constant 0 : i32
    %c0_i32_0 = arith.constant 0 : i32
    return %arg0, %arg1, %arg2, %c0_i32 : i32, i32, i32, i32
  }
}

</mosaic_0001>

<bundles_post_ra>
// kernel: tpu_custom_call.1
= control target key start
LH: loop header
LB: loop body
LE: loop exit
PB: predicated region body
PF: predicated region fallthrough
CT: control target
= control target key end

     0   :  { %s1608_s0 = inlined_call_operand.hbm [shape: s32[3], index: 0, kind: input, shape index: {}]   ;;  %s1609_s2 = inlined_call_operand.hbm [shape: bf16[2,5,32,32], index: 2, kind: input, shape index: {}]   ;;  %s1610_s3 = inlined_call_operand.hbm [shape: bf16[3,32,32], index: 3, kind: input, shape index: {}]   ;;  %s1611_s4 = inlined_call_operand.vmem [shape: f32[3,1,32], index: 4, kind: input, shape index: {}]   ;;  %s1612_s5 = inlined_call_operand.vmem [shape: f32[1,32], index: 5, kind: input, shape index: {}]   ;;  %s1613_s6 = inlined_call_operand.vmem [shape: f32[1,32], index: 6, kind: input, shape index: {}]   ;;  %s1614_s7 = inlined_call_operand.hbm [shape: bf16[3,2,32,32], index: 7, kind: output, shape index: {}]   ;;  %s1615_s1 = inlined_call_operand.vmem [shape: s32[3], index: 1, kind: input, shape index: {}]  }
   0x1   :  { %1633 = sst [smem:[#allocation30_spill]] %s1611_s4  ;;  %s865_s26 = scalar_lea.hbm %s1608_s0, 16 }
   0x2   :  { %1634 = sst [smem:[#allocation31_spill]] %s1612_s5  ;;  %p866_p0 = scmp.ne.s32.totalorder %s1608_s0, %s865_s26 }
   0x3   :  { %1635 = sst [smem:[#allocation32_spill]] %s1613_s6  ;;  %p869_p1 = scmp.lt.u32.totalorder %s865_s26, %s1608_s0 }
   0x4   :  { %1636 = sst [smem:[#allocation33_spill]] %s1614_s7 }
   0x5   :  { %p871_p2 = pnand %p869_p1, %p866_p0 }
   0x7   :  { %874 = shalt.err (!%p871_p2)  }
   0x8   :  { %s1117_s8 = smov [#allocation3]   ;;  %s14_s13 = sshll.u32 %s1615_s1, 4  ;;  %s15_s13 = int_to_ptr.vmem [resolvable:$true] %s14_s13 }
   0x9   :  { %13 = dma.hbm_to_smem %s1608_s0, 16, %s1117_s8, [#allocation2] }
   0xa   :  { %s875_s14 = scalar_lea.vmem %s15_s13, 16  ;;  %p880_p4 = scmp.lt.s32.totalorder %s15_s13, %s15_s13 }
   0xb   :  { %p876_p3 = scmp.ne.s32.totalorder %s15_s13, %s875_s14  ;;  %p881_p5 = scmp.lt.s32.totalorder %s875_s14, %s875_s14 }
   0xd   :  { %p882_p6 = por %p881_p5, %p880_p4 }
   0xf   :  { %p883_p7 = pnand %p882_p6, %p876_p3 }
  0x11   :  { %886 = shalt.err (!%p883_p7)  }
  0x12   :  { %s1118_s15 = smov [#allocation4]  }
  0x13   :  { %17 = dma.vmem_to_smem %s15_s13, 16, %s1118_s15, [#allocation2] }
  0x14   :  { %1039 = dma.done.wait [#allocation2], 32 }
  0x15   :  { %1040 = vsyncadd [#allocation2], 4294967264 }
  0x16   :  { %19 = sfence }
  0x17   :  { %20 = vsyncpa [#allocation6], 0 }
  0x18   :  { %22 = vsyncpa [#allocation6 + $0x1], 0 }
  0x19   :  { %23 = vsyncpa [#allocation9], 0 }
  0x1a   :  { %25 = vsyncpa [#allocation9 + $0x1], 0 }
  0x1b   :  { %26 = vsyncpa [#allocation7], 0 }
  0x1c   :  { %28 = vsyncpa [#allocation7 + $0x1], 0  ;;  %s1183_s0 = smov 0   ;;  %s1185_s1 = smov 0  }
  0x1d   :  { %s1187_s16 = smov 0   ;;  %s1189_s17 = smov 0  }
  0x1e   :  { %s1191_s18 = smov 0   ;;  %s1193_s19 = smov 0  }
  0x1f   :  { %s1195_s20 = smov 0   ;;  %s1197_s21 = smov 0  }
  0x20   :  { %s1199_s22 = smov 0   ;;  %s1201_s23 = smov 0  }
  0x21   :  { %s1203_s24 = smov 0   ;;  %s1205_s25 = smov 0  }
  0x22   :  { %s1207_s26 = smov 0   ;;  %s1209_s27 = smov 0  }
  0x23   :  { %s1211_s28 = smov 0   ;;  %s1213_s29 = smov 0  }
  0x24 LB: > { %1637 = sst [smem:[#allocation17_spill]] %s1055_s0  ;;  %s647_s30 = sadd.s32 4294967295, %s1115_s29   ;;  %s1115_s29 = sphi %s1213_s29, %s34_s29   ;;  %s1111_s28 = sphi %s1211_s28, %s1700_s28   ;;  %s1107_s27 = sphi %s1209_s27, %s1689_s27   ;;  %s1103_s26 = sphi %s1207_s26, %s1699_s26   ;;  %s1099_s25 = sphi %s1205_s25, %s1698_s25   ;;  %s1095_s24 = sphi %s1203_s24, %s1687_s24   ;;  %s1091_s23 = sphi %s1201_s23, %s1686_s23   ;;  %s1087_s22 = sphi %s1199_s22, %s1685_s22   ;;  %s1083_s21 = sphi %s1197_s21, %s1697_s21   ;;  %s1079_s20 = sphi %s1195_s20, %s1696_s20   ;;  %s1075_s19 = sphi %s1193_s19, %s1695_s19   ;;  %s1071_s18 = sphi %s1191_s18, %s1694_s18   ;;  %s1067_s17 = sphi %s1189_s17, %s1693_s17   ;;  %s1063_s16 = sphi %s1187_s16, %s1692_s16   ;;  %s1059_s1 = sphi %s1185_s1, %s1691_s1   ;;  %s1055_s0 = sphi %s1183_s0, %s1683_s0  }
  0x25   : > { %1638 = sst [smem:[#allocation18_spill]] %s1059_s1  ;;  %s46_s9 = sadd.s32 1, %s1103_s26 }
  0x26   : > { %1639 = sst [smem:[#allocation19_spill]] %s1087_s22  ;;  %s49_s10 = sadd.s32 1, %s1107_s27 }
  0x27   : > { %1640 = sst [smem:[#allocation20_spill]] %s1091_s23  ;;  %p47_p8 = scmp.ge.s32.totalorder %s46_s9, 2 }
  0x28   : > { %1641 = sst [smem:[#allocation21_spill]] %s1095_s24  ;;  %s53_s11 = sadd.s32 1, %s1111_s28 }
  0x29   : > { %1642 = sst [smem:[#allocation22_spill]] %s1099_s25  ;;  %s1702_s9 = smov (%p47_p8, %s46_s9), 0 }
  0x2a   : > { %1643 = sst [smem:[#allocation23_spill]] %s1103_s26  ;;  %s1704_s10 = smov (!%p47_p8, %s49_s10), %s1107_s27 }
  0x2b   : > { %1644 = sst [smem:[#allocation24_spill]] %s1107_s27  ;;  %s1277_s14 = ssub.s32 %s1103_s26, %s1702_s9 }
  0x2c   : > { %s1269_s12 = sld [smem:[#allocation3 + %s1111_s28]]  ;;  %p73_p9 = scmp.ne.s32.totalorder %s1087_s22, %s1083_s21 }
  0x2d   : > { %1645 = sst [smem:[#allocation25_spill]] %s1702_s9  ;;  %p51_p10 = scmp.ge.s32.totalorder %s1704_s10, 2 }
  0x2e   : > { %p1630_p11 = scmp.eq.s32.totalorder %s1115_s29, 0  ;;  %p79_p12 = scmp.ne.s32.totalorder %s1083_s21, %s1079_s20 }
  0x2f   : > { %p1284_p13 = scmp.eq.s32.totalorder %s647_s30, 0  ;;  %s1706_s10 = smov (%p51_p10, %s1704_s10), 0 }
  0x30   : > { %1647 = sst [smem:[#allocation26_spill]] %s1706_s10  ;;  %s1708_s11 = smov (!%p51_p10, %s53_s11), %s1111_s28 }
  0x31   : > { %s59_s13 = ssub.s32 %s1107_s27, %s1706_s10  ;;  %p1295_p0 = por %p1630_p11, %p73_p9 }
  0x32   : > { %p55_p1 = scmp.ge.s32.totalorder %s1708_s11, 3  ;;  %p1301_p2 = por %p1284_p13, %p79_p12 }
  0x33   : > { %s190_s9 = sadd.s32 1, %s1063_s16  ;;  %p200_p3 = scmp.ne.s32.totalorder %s1063_s16, %s1059_s1 }
  0x34   : > { %s1649_s20 = scalar_select %p1301_p2, 1, 0 }
  0x35   : > { %s1710_s11 = smov (%p55_p1, %s1708_s11), 0  ;;  %p201_p4 = scmp.eq.s32.totalorder %s647_s30, 11 }
  0x36   : > { %1650 = sst [smem:[#allocation27_spill]] %s1710_s11  ;;  %p206_p5 = scmp.ne.s32.totalorder %s1059_s1, %s1055_s0 }
  0x37   : > { %s58_s10 = sld [smem:[#allocation3 + %s1710_s11]]  ;;  %s1315_s7 = ssub.s32 %s1111_s28, %s1710_s11 }
  0x38   : > { %s185_s24 = sor.u32 %s1315_s7, %s59_s13  ;;  %p1320_p7 = por %p201_p4, %p200_p3 }
  0x39   : > { %s187_s23 = sor.u32 %s185_s24, %s1277_s14  ;;  %s1653_s30 = sadd.s32 4294967294, %s1115_s29  }
  0x3a   : > { %s1651_s6 = scalar_select %p1320_p7, 1, 0 }
  0x3b   : > { %p188_p8 = scmp.eq.s32.totalorder %s187_s23, 0  ;;  %p207_p9 = scmp.eq.s32.totalorder %s1653_s30, 11 }
  0x3c   : > { %1652 = sst [smem:[#allocation28_spill]] %s1651_s6  ;;  %p1629_p10 = scmp.lt.s32.totalorder %s1115_s29, 12 }
  0x3d   : > { %s1328_s11 = scalar_select %p188_p8, %s1063_s16, %s190_s9  }
  0x3e   : > { %s60_s0 = ssub.s32 %s1269_s12, %s58_s10  ;;  %p1331_p12 = por %p207_p9, %p206_p5 }
  0x3f   : > { %s61_s24 = sor.u32 %s60_s0, %s59_s13  ;;  %s233_s4 = sand.u32 1, %s1087_s22  }
  0x40   : > { %s1654_s5 = scalar_select %p1331_p12, 1, 0 }
  0x41   : > { %s63_s6 = sor.u32 %s1277_s14, %s61_s24  ;;  %s651_s23 = sshll.u32 %s233_s4, 3 }
  0x42   : > { %p64_p1 = scmp.eq.s32.totalorder %s63_s6, 0  ;;  %s652_s25 = sshll.u32 %s1103_s26, 1 }
  0x43   : > { %s1655_s30 = sadd.s32 1, %s1087_s22  ;;  %s698_s0 = smul.u32 20, %s1107_s27 }
  0x44   : > { %s1341_s1 = scalar_select %p64_p1, %s1087_s22, %s1655_s30  }
  0x45   : > { %s699_s9 = scalar_select %p1295_p0, [#allocation3], [#allocation11] }
  0x46   : > { %1656 = sst [smem:[#allocation29_spill]] %s1341_s1  ;;  %s237_s12 = scalar_lea.vmem [#allocation5], %s651_s23 }
  0x47   : > { %s700_s10 = scalar_select %p1295_p0, %s1111_s28, 0 }
  0x48   : > { %s1712_s9 = smov (!%p1629_p10, %s699_s9), [#allocation12]  ;;  %s249_s13 = sshll.u32 %s237_s12, 4  ;;  %s1353_s13 = int_to_ptr.vmem [resolvable:$true] %s249_s13 }
  0x49   : > { %s1714_s10 = smov (!%p1629_p10, %s700_s10), 0  ;;  %p1359_p3 = pnand %p1629_p10, %p1295_p0 }
  0x4a   : > { %s238_s6 = sld [smem:[%s1712_s9 + %s1714_s10]]  ;;  %p658_p4 = scmp.ge.s32.totalorder %s1115_s29, 1 }
  0x4b   : > { %p284_p5 = scmp.lt.s32.totalorder %s1115_s29, 13  ;;  %s92_s10 = sadd.s32 1, %s1075_s19 }
  0x4c   : > { %s1377_s1 = scalar_lea.sflag [#allocation6], %s233_s4  ;;  %p889_p1 = pneg %p1359_p3 }
  0x4d   : > { %p1365_p8 = pnand %p658_p4, %p284_p5  ;;  %s892_s27 = scalar_lea.hbm %s1609_s2, 2560 }
  0x4f   : > { %s1658_s24 = scalar_select %p1365_p8, 1, 0 }
  0x50   : > { %s653_s30 = sshll.u32 %s238_s6, 2 }
  0x51   : > { %s244_s23 = sadd.s32 %s653_s30, %s652_s25 }
  0x52   : > { %s246_s12 = sadd.s32 %s698_s0, %s244_s23 }
  0x53   : > { %s654_s9 = sshll.u32 %s246_s12, 6 }
  0x54   : > { %s1373_s26 = scalar_lea.hbm %s1609_s2, %s654_s9 }
  0x55   : > { %s887_s22 = scalar_lea.hbm %s1373_s26, 128  ;;  %p893_p10 = scmp.lt.u32.totalorder %s1373_s26, %s1609_s2 }
  0x56   : > { %p888_p9 = scmp.ne.s32.totalorder %s1373_s26, %s887_s22  ;;  %p894_p11 = scmp.lt.u32.totalorder %s892_s27, %s887_s22 }
  0x57   : > { %p896_p6 = scmp.lt.u32.totalorder %s887_s22, %s1373_s26 }
  0x58   : > { %p890_p4 = pnand %p889_p1, %p888_p9  ;;  %p895_p0 = por %p894_p11, %p893_p10 }
  0x5a   : > { %p891_p5 = pneg %p890_p4  ;;  %p897_p12 = por %p896_p6, %p895_p0 }
  0x5c   : > { %p898_p7 = pnand %p897_p12, %p891_p5 }
  0x5e   : > { %901 = shalt.err (!%p898_p7)
}
  0x5f   : > { %s902_s4 = scalar_lea.vmem %s1353_s13, 128  ;;  %s1119_s23 = smov [#allocation5]  }
  0x60   : > { %p903_p9 = scmp.ne.s32.totalorder %s1353_s13, %s902_s4  ;;  %s907_s12 = sshll.u32 %s1119_s23, 4  ;;  %s908_s12 = int_to_ptr.vmem [resolvable:$false] %s907_s12 }
  0x61   : > { %s909_s9 = scalar_lea.vmem %s908_s12, 256  ;;  %p910_p8 = scmp.lt.s32.totalorder %s1353_s13, %s908_s12 }
  0x62   : > { %p905_p4 = pnand %p903_p9, %p889_p1  ;;  %p911_p11 = scmp.lt.s32.totalorder %s909_s9, %s902_s4 }
  0x64   : > { %p906_p2 = pneg %p905_p4  ;;  %p912_p10 = por %p911_p11, %p910_p8 }
  0x66   : > { %p913_p6 = pnand %p912_p10, %p906_p2 }
  0x68   : > { %916 = shalt.err (!%p913_p6)
}
  0x69   : > { %s1120_s22 = smov 64   ;;  %s1121_s8 = smov 4  }
  0x6a   : > { %712 = dma.hbm_to_vmem [thread:$0]  (!%p1359_p3), %s1373_s26, 128, %s1353_s13, %s1377_s1, %s1120_s22, %s1120_s22, %s1121_s8  }
  0x6b   : > { %p1659_p2 = scmp.eq.s32.totalorder %s1315_s7, 0  ;;  %p1660_p7 = scmp.eq.s32.totalorder %s1115_s29, 0 }
  0x6c   : > { %p1661_p12 = scmp.ne.s32.totalorder %s1075_s19, %s1071_s18  ;;  %p105_p0 = scmp.ne.s32.totalorder %s1071_s18, %s1067_s17 }
  0x6d   : > { %s1413_s25 = scalar_select %p1659_p2, %s1075_s19, %s92_s10  }
  0x6e   : > { %p101_p8 = por %p1661_p12, %p1660_p7  ;;  %s259_s0 = sand.u32 1, %s1075_s19  }
  0x6f   : > { %s682_s27 = sshll.u32 %s1111_s28, 8  ;;  %p1426_p1 = por %p105_p0, %p1284_p13 }
  0x70   : > { %s655_s14 = sshll.u32 %s259_s0, 4  ;;  %s1433_s1 = scalar_lea.hbm %s1610_s3, %s682_s27 }
  0x71   : > { %p1663_p3 = scmp.lt.s32.totalorder %s1115_s29, 12  ;;  %s263_s17 = scalar_lea.vmem [#allocation8], %s655_s14 }
  0x72   : > { %s270_s26 = sshll.u32 %s263_s17, 4  ;;  %s1443_s15 = scalar_lea.sflag [#allocation9], %s259_s0  ;;  %s1441_s26 = int_to_ptr.vmem [resolvable:$true] %s270_s26 }
  0x73   : > { %p1437_p5 = pnand %p1663_p3, %p101_p8  ;;  %s917_s13 = scalar_lea.hbm %s1433_s1, 256 }
  0x74   : > { %p918_p13 = scmp.ne.s32.totalorder %s1433_s1, %s917_s13  ;;  %s922_s12 = scalar_lea.hbm %s1610_s3, 768 }
  0x75   : > { %p919_p9 = pneg %p1437_p5  ;;  %p923_p10 = scmp.lt.u32.totalorder %s1433_s1, %s1610_s3 }
  0x76   : > { %p924_p6 = scmp.lt.u32.totalorder %s922_s12, %s917_s13  ;;  %p926_p7 = scmp.lt.u32.totalorder %s917_s13, %s1433_s1 }
  0x77   : > { %p920_p4 = pnand %p919_p9, %p918_p13 }
  0x78   : > { %p925_p2 = por %p924_p6, %p923_p10 }
  0x79   : > { %p921_p11 = pneg %p920_p4 }
  0x7a   : > { %p927_p12 = por %p926_p7, %p925_p2 }
  0x7c   : > { %p928_p8 = pnand %p927_p12, %p921_p11 }
  0x7e   : > { %931 = shalt.err (!%p928_p8)
}
  0x7f   : > { %s932_s0 = scalar_lea.vmem %s1441_s26, 256  ;;  %s1122_s14 = smov [#allocation8]  }
  0x80   : > { %p933_p0 = scmp.ne.s32.totalorder %s1441_s26, %s932_s0  ;;  %s937_s30 = sshll.u32 %s1122_s14, 4  ;;  %s938_s30 = int_to_ptr.vmem [resolvable:$false] %s937_s30 }
  0x81   : > { %s939_s4 = scalar_lea.vmem %s938_s30, 512  ;;  %p940_p4 = scmp.lt.s32.totalorder %s1441_s26, %s938_s30 }
  0x82   : > { %p935_p3 = pnand %p933_p0, %p919_p9  ;;  %p941_p10 = scmp.lt.s32.totalorder %s939_s4, %s932_s0 }
  0x84   : > { %p936_p13 = pneg %p935_p3  ;;  %p942_p6 = por %p941_p10, %p940_p4 }
  0x86   : > { %p943_p2 = pnand %p942_p6, %p936_p13 }
  0x88   : > { %946 = shalt.err (!%p943_p2)
}
  0x89   : > { %715 = dma.hbm_to_vmem [thread:$0]  (!%p1437_p5), %s1433_s1, 256, %s1441_s26, %s1443_s15, %s1120_s22, %s1120_s22, %s1121_s8  }
  0x8a   : > { %p1665_p9 = scmp.ne.s32.totalorder %s1658_s24, 0 }
  0x8b   : > { %s290_s17 = sand.u32 (!%p1665_p9), 1, %s1083_s21   ;;  %p1666_p11 = scmp.ne.s32.totalorder (!%p1665_p9), %s1649_s20, 0 }
  0x8c   : > { %288 = sbr.rel (%p1665_p9) target bundleno = 748 (0x2ec), region = 40  ;;  %s659_s13 = sshll.u32 (!%p1665_p9), %s290_s17, 3 }
  0x8d   : > { %s291_s10 = scalar_lea.sflag (!%p1665_p9), [#allocation6], %s290_s17  ;;  %s294_s23 = scalar_lea.vmem (!%p1665_p9), [#allocation5], %s659_s13 }
  0x93   : > { %1042 = dma.done.wait (%p1666_p11), %s291_s10, 128  }
  0x94   : > { %1044 = vsyncadd (%p1666_p11), %s291_s10, 4294967168  ;;  %s299_s7 = sand.u32 1, %s1071_s18  }
  0x95   : > { %s660_s12 = sshll.u32 %s299_s7, 4  ;;  %s300_s9 = scalar_lea.sflag [#allocation9], %s299_s7 }
  0x96   : > { %s303_s22 = scalar_lea.vmem [#allocation8], %s660_s12 }
  0x97   : > { %1046 = dma.done.wait (%p1426_p1), %s300_s9, 256  }
  0x98   : > { %1048 = vsyncadd (%p1426_p1), %s300_s9, 4294967040  ;;  %s1667_s24 = sld [smem:[#allocation18_spill]]  ;;  %s1668_s8 = sld [smem:[#allocation22_spill]]  ;;  %v1123_v0 = vmov 0.0   ;;  %vm1124_vm0 = vmmov 0   ;;  %v858_v1 = vld [vmem:[%s303_s22] sm:$0xff]  }
  0x99   : > { %690 = vmatprep.subr.bf16.mxu0 %v1123_v0  ;;  %694 = vmatprep.mubr.msk.bf16.mxu0 %vm1124_vm0, %v1123_v0  ;;  %v859_v2 = vld [vmem:[%s303_s22 + $0x8] sm:$0xff]   ;;  %vm375_vm1 = vcmask 261120   ;;  %s1669_s27 = sld [smem:[#allocation30_spill]] }
  0x9a   : > { %691 = vmatpush3.bf16.msra.mxu0 %v858_v1  ;;  %v860_v3 = vld [vmem:[%s294_s23] sm:$0xff]  }
  0x9b   : > { %692 = vmatprep.subr.bf16.mxu0 %v1123_v0 }
  0x9e   : > { %s335_s1 = sand.u32 1, %s1667_s24   ;;  %s420_s26 = sld [smem:[#allocation4 + %s1668_s8]]  ;;  %693 = vmatpush3.bf16.msra.mxu0 %v859_v2 }
  0x9f   : > { %s661_s20 = sshll.u32 %s335_s1, 3  ;;  %p340_p1 = scmp.lt.s32.totalorder %s1668_s8, 2 }
  0xa0   : > { %s1496_s14 = scalar_lea.vmem [#allocation10], %s661_s20 }
  0xa1   : > { %695 = vmatmul.mubr.msk.bf16.vlgmr.msra.gmra.mrb[0].mxu0 %vm375_vm1, %v860_v3  ;;  %s1716_s8 = smov (!%p340_p1, %s1668_s8), 2 }
  0xa2   : > { %s342_s0 = scalar_lea.vmem %s1669_s27, %s1716_s8 }
  0xa3   : > { %v662_v4 = vld [vmem:[%s342_s0] ss:$0 sm:$0xff] }
  0xa4   : > { %p667_p5 = scmp.le.s32.totalorder %s420_s26, 0 }
  0xa5   : > { %s1670_s17 = sld [smem:[#allocation31_spill]] (!%p667_p5)  ;;  %s1671_s23 = sld [smem:[#allocation32_spill]] (!%p667_p5)  ;;  %vm478_vm2 = vcmask (!%p667_p5), 257024  }
  0xab   : > { %v668_v30 = vld [vmem:[%s1670_s17] ss:$0 sm:$0xff] (!%p667_p5) }
  0xac   : > { %v669_v32 = vld [vmem:[%s1671_s23] ss:$0 sm:$0xff] (!%p667_p5) }
 0x171   : > { %424 = sbr.rel (%p667_p5) target bundleno = 695 (0x2b7), region = 52 }
 0x174   : > { %v413_v5 = vpop.f32.mrb[0].mxu0 }
 0x175   : > { %v414_v6 = vadd.f32 %v662_v4, %v413_v5  ;;  %v696_v7 = vpop.f32.mrb[1].mxu0 }
 0x176   : > { %v416_v8 = vpop.f32.mrb[2].mxu0 }
 0x177   : > { %v417_v9 = vadd.f32 %v662_v4, %v416_v8  ;;  %v697_v10 = vpop.f32.mrb[3].mxu0  ;;  %v425_v11 = vsel (!%p667_p5), %vm375_vm1, %v414_v6, 0.0 }
 0x178   : > { %426 = vadd.xlane.f32.xlu0 %v425_v11 }
 0x179   : > { %v428_v12 = vsel %vm375_vm1, %v417_v9, 0.0 }
 0x17c   : > { %429 = vadd.xlane.f32.xlu0 %v428_v12 }
 0x205   : > { %v427_v13 = vpop.xlane.xlu0 %426 }
 0x206   : > { %v432_v14 = vmul.f32 0.03125, %v427_v13 }
 0x208   : > { %v434_v15 = vsub.f32 %v414_v6, %v432_v14 }
 0x209   : > { %v430_v16 = vpop.xlane.xlu0 %429 }
 0x20a   : > { %v433_v17 = vmul.f32 0.03125, %v430_v16  ;;  %v436_v18 = vmul.f32 %v434_v15, %v434_v15 }
 0x20c   : > { %v435_v19 = vsub.f32 %v417_v9, %v433_v17  ;;  %v438_v20 = vsel %vm375_vm1, %v436_v18, 0.0 }
 0x20d   : > { %439 = vadd.xlane.f32.xlu1 %v438_v20 }
 0x20e   : > { %v437_v21 = vmul.f32 %v435_v19, %v435_v19 }
 0x210   : > { %v441_v22 = vsel %vm375_vm1, %v437_v21, 0.0 }
 0x211   : > { %442 = vadd.xlane.f32.xlu1 %v441_v22 }
 0x29a   : > { %v440_v23 = vpop.xlane.xlu1 %439 }
 0x29b   : > { %v444_v24 = vmul.f32 0.03125, %v440_v23 }
 0x29d   : > { %v446_v25 = vadd.f32 1e-05, %v444_v24 }
 0x29e   : > { %v443_v26 = vpop.xlane.xlu1 %442 }
 0x29f   : > { %861 = vrsqrt.f32 %v446_v25  ;;  %v445_v27 = vmul.f32 0.03125, %v443_v26 }
 0x2a1   : > { %v447_v28 = vadd.f32 1e-05, %v445_v27 }
 0x2a3   : > { %863 = vrsqrt.f32 %v447_v28 }
 0x2a9   : > { %v862_v29 = vpop.eup %861 }
 0x2aa   : > { %v450_v31 = vmul.f32 %v862_v29, %v434_v15 }
 0x2ac   : > { %v459_v33 = vmul.f32 %v668_v30, %v450_v31 }
 0x2ad   : > { %v864_v34 = vpop.eup %863 }
 0x2ae   : > { %v468_v35 = vadd.f32 %v669_v32, %v459_v33  ;;  %v451_v36 = vmul.f32 %v864_v34, %v435_v19 }
 0x2b0   : > { %v683_v37 = vpack.c.bf16 %v468_v35, %v468_v35  ;;  %v460_v38 = vmul.f32 %v668_v30, %v451_v36 }
 0x2b2   : > { %479 = vst.msk [vmem:[%s1496_s14] sm:$0xf] %vm478_vm2, %v683_v37  ;;  %v469_v39 = vadd.f32 %v669_v32, %v460_v38 }
 0x2b4   : > { %v684_v40 = vpack.c.bf16 %v469_v39, %v469_v39 }
 0x2b6   : > { %480 = vst.msk [vmem:[%s1496_s14 + $0x4] sm:$0xf] %vm478_vm2, %v684_v40 }
 0x2b7 PF: > { %s1672_s7 = sld [smem:[#allocation22_spill]] }
 0x2bd   : > { %s481_s12 = sld [smem:[#allocation4 + %s1672_s7]] }
 0x2c3   : > { %p672_p7 = scmp.ne.s32.totalorder %s481_s12, 0 }
 0x2c4   : > { %v685_v41 = vpack.c.bf16 (!%p672_p7), %v414_v6, %v414_v6  ;;  %vm494_vm3 = vcmask (!%p672_p7), 257024   ;;  %v686_v42 = vpack.c.bf16 (!%p672_p7), %v417_v9, %v417_v9 }
 0x2c5   : > { %485 = sbr.rel (%p672_p7) target bundleno = 716 (0x2cc), region = 56 }
 0x2c6   : > { %495 = vst.msk [vmem:[%s1496_s14] sm:$0xf] (!%p672_p7), %vm494_vm3, %v685_v41  ;;  %496 = vst.msk [vmem:[%s1496_s14 + $0x4] sm:$0xf] (!%p672_p7), %vm494_vm3, %v686_v42 }
 0x2cc PF: > { %s1673_s9 = sld [smem:[#allocation20_spill]]  ;;  %s1674_s22 = sld [smem:[#allocation21_spill]] }
 0x2cd   : > { %s1675_s24 = sld [smem:[#allocation22_spill]]  ;;  %s1677_s26 = sld [smem:[#allocation28_spill]] }
 0x2ce   : > { %s515_s0 = sshll.u32 %s1496_s14, 4  ;;  %s1678_s10 = sld [smem:[#allocation33_spill]]  ;;  %s1517_s0 = int_to_ptr.vmem [resolvable:$true] %s515_s0 }
 0x2cf   : > { %s1526_s7 = scalar_lea.sflag [#allocation7], %s335_s1  ;;  %s947_s12 = scalar_lea.vmem %s1517_s0, 128 }
 0x2d0   : > { %p948_p12 = scmp.ne.s32.totalorder %s1517_s0, %s947_s12  ;;  %s1125_s14 = smov [#allocation10]  }
 0x2d2   : > { %s676_s20 = sshll.u32 %s1673_s9, 1  ;;  %s677_s6 = sshll.u32 %s1674_s22, 2 }
 0x2d3   : > { %s678_s15 = sshll.u32 %s1675_s24, 3  ;;  %s510_s27 = sadd.s32 %s677_s6, %s676_s20 }
 0x2d4   : > { %s512_s30 = sadd.s32 %s678_s15, %s510_s27  ;;  %p1679_p8 = scmp.ne.s32.totalorder %s1677_s26, 0 }
 0x2d5   : > { %s679_s4 = sshll.u32 %s512_s30, 6  ;;  %s951_s9 = sshll.u32 %s1125_s14, 4  ;;  %s952_s9 = int_to_ptr.vmem [resolvable:$false] %s951_s9 }
 0x2d6   : > { %s1522_s23 = scalar_lea.hbm %s1678_s10, %s679_s4  ;;  %p949_p0 = pnand %p948_p12, %p1679_p8 }
 0x2d7   : > { %s953_s22 = scalar_lea.vmem %s952_s9, 256  ;;  %p954_p13 = scmp.lt.s32.totalorder %s1517_s0, %s952_s9 }
 0x2d8   : > { %p950_p3 = pneg %p949_p0  ;;  %p955_p4 = scmp.lt.s32.totalorder %s953_s22, %s947_s12 }
 0x2da   : > { %p956_p10 = por %p955_p4, %p954_p13 }
 0x2dc   : > { %p957_p6 = pnand %p956_p10, %p950_p3 }
 0x2de   : > { %960 = shalt.err (!%p957_p6)
}
 0x2df   : > { %s961_s1 = scalar_lea.hbm %s1522_s23, 128  ;;  %s965_s20 = scalar_lea.hbm %s1678_s10, 1536 }
 0x2e0   : > { %p962_p2 = scmp.ne.s32.totalorder %s1522_s23, %s961_s1  ;;  %p966_p1 = scmp.lt.u32.totalorder %s1522_s23, %s1678_s10 }
 0x2e1   : > { %p967_p5 = scmp.lt.u32.totalorder %s965_s20, %s961_s1  ;;  %p969_p12 = scmp.lt.u32.totalorder %s961_s1, %s1522_s23 }
 0x2e2   : > { %p963_p9 = pnand %p962_p2, %p1679_p8 }
 0x2e3   : > { %p968_p7 = por %p967_p5, %p966_p1 }
 0x2e4   : > { %p964_p11 = pneg %p963_p9 }
 0x2e5   : > { %p970_p0 = por %p969_p12, %p968_p7 }
 0x2e7   : > { %p971_p3 = pnand %p970_p0, %p964_p11 }
 0x2e9   : > { %974 = shalt.err (!%p971_p3)
}
 0x2ea   : > { %s1126_s27 = smov 64   ;;  %s1127_s30 = smov 4  }
 0x2eb   : > { %705 = dma.vmem_to_hbm [thread:$0]  (%p1679_p8), %s1517_s0, 128, %s1522_s23, %s1526_s7, %s1126_s27, %s1126_s27, %s1127_s30  }
 0x2ec PF: > { %s1680_s4 = sld [smem:[#allocation17_spill]]  ;;  %p721_p13 = scmp.ge.s32.totalorder %s1115_s29, 2 }
 0x2ed   : > { %p1681_p4 = scmp.ne.s32.totalorder %s1654_s5, 0 }
 0x2ef   : > { %p717_p10 = pnand %p721_p13, %p1681_p4 }
 0x2f2   : > { %s530_s17 = sand.u32 1, %s1680_s4  }
 0x2f3   : > { %s531_s13 = scalar_lea.sflag [#allocation7], %s530_s17 }
 0x2f4   : > { %1050 = dma.done.wait (!%p717_p10), %s531_s13, 128  }
 0x2f5   : > { %1052 = vsyncadd (!%p717_p10), %s531_s13, 4294967168  ;;  %s34_s29 = sadd.s32 1, %s1115_s29   ;;  %s1683_s0 = sld [smem:[#allocation18_spill]] }
 0x2f6   : > { %p1555_p6 = scmp.ge.s32.totalorder %s34_s29, 14   ;;  %s1684_s26 = sld [smem:[#allocation19_spill]] }
 0x2f7   : > { %s1685_s22 = sld [smem:[#allocation29_spill]]  ;;  %s1686_s23 = sld [smem:[#allocation23_spill]] }
 0x2f8   : > { %s1687_s24 = sld [smem:[#allocation24_spill]]  ;;  %s1688_s5 = sld [smem:[#allocation25_spill]] }
 0x2f9   : > { %s1689_s27 = sld [smem:[#allocation26_spill]]  ;;  %s1690_s7 = sld [smem:[#allocation27_spill]] }
 0x2fa   : > { %s1691_s1 = smov %s1063_s16  ;;  %s1692_s16 = smov %s1328_s11 }
 0x2fb   : > { %s1693_s17 = smov %s1071_s18  ;;  %s1694_s18 = smov %s1075_s19 }
 0x2fc   : > { %s1695_s19 = smov %s1413_s25  ;;  %s1696_s20 = smov %s1083_s21 }
 0x2fd   : > { %s1697_s21 = smov %s1684_s26  ;;  %s1698_s25 = smov %s1111_s28 }
 0x2fe   : > { %s1699_s26 = smov %s1688_s5  ;;  %33 = sbr.rel (!%p1555_p6) target bundleno = 36 (0x24), region = 109 }
 0x2ff   : > { %s1700_s28 = smov %s1690_s7 }
 0x305   :  { %536 = vsyncpa [#allocation6], 1 }
 0x306   :  { %538 = vsyncpa [#allocation6 + $0x1], 1 }
 0x307   :  { %539 = vsyncpa [#allocation9], 1 }
 0x308   :  { %541 = vsyncpa [#allocation9 + $0x1], 1 }
 0x309   :  { %542 = vsyncpa [#allocation7], 1 }
 0x30a   :  { %544 = vsyncpa [#allocation7 + $0x1], 1 }

</bundles_post_ra>
